<compile_context>
chip_gen: v5e
topology: v5e:2x2
jax: 0.10.0
libtpu: 0.0.40
codegen_flags: <defaults>
</compile_context>

<pallas_src>
import jax
import jax.numpy as jnp
from jax.experimental import pallas as pl
from jax.experimental.pallas import tpu as pltpu


def _round_up(x, m):
    return (x + m - 1) // m * m


def _patch_embed_kernel(x_ref, w_ref, b_ref, o_ref):
    # x_ref: (tm, Kp) bf16 patch rows; w_ref: (Kp, tn) bf16; b_ref: (1, tn) f32.
    acc = jnp.dot(x_ref[...], w_ref[...], preferred_element_type=jnp.float32)
    o_ref[...] = (acc + b_ref[...]).astype(o_ref.dtype)


def patch_embed_matmul(patches, weight, bias, *, tm=512,
                       out_dtype=jnp.float32):
    """patches: [M, K], weight: [K, D], bias: [D] -> [M, D] in out_dtype."""
    M, K = patches.shape
    Kw, D = weight.shape
    assert Kw == K and bias.shape == (D,)

    # --- K alignment: pad the contraction dim to a multiple of 128 so MXU
    # lanes are full and LHS loads are unmasked.  Both sides are zero-padded,
    # so the contraction result is unchanged.
    Kp = _round_up(K, 128)
    if Kp != K:
        patches = jnp.pad(patches, ((0, 0), (0, Kp - K)))
        weight = jnp.pad(weight, ((0, Kp - K), (0, 0)))

    # --- D handling: lane-dense only when it is cheap.  For D <= 128 keep the
    # true D (block last dim == full array dim is legal; masked stores beat
    # writing 4x padded output bytes + a slice round trip).  For large,
    # non-128-aligned D pad to a multiple of 128 and slice afterwards.
    if D <= 128 or D % 128 == 0:
        Dp = D
    else:
        Dp = _round_up(D, 128)
        weight = jnp.pad(weight, ((0, 0), (0, Dp - D)))
        bias = jnp.pad(bias, (0, Dp - D))

    # bf16 streaming, f32 MXU accumulation; bias added in f32 (no bf16 VPU
    # dependence, works on v5e).
    x = patches.astype(jnp.bfloat16)
    w = weight.astype(jnp.bfloat16)
    b2 = bias.reshape(1, Dp).astype(jnp.float32)

    # --- Row tiling: big tiles amortize per-step overhead, but keep >= 2 grid
    # steps along M when possible so both v7x TensorCores get balanced halves.
    tm_eff = min(tm, _round_up(M, 16))
    if M > 16 and pl.cdiv(M, tm_eff) < 2:
        tm_eff = _round_up(pl.cdiv(M, 2), 16)
    grid_m = pl.cdiv(M, tm_eff)

    # --- Weight residency: if the double-buffered bf16 weight fits comfortably
    # in VMEM (true for any realistic tokenizer: K,D ~ 1K -> a few MiB), keep
    # the whole [Kp, Dp] resident (grid_n == 1, constant block index => DMA'd
    # once).  Otherwise tile D and put the weight-varying axis OUTERMOST so the
    # weight is only re-fetched grid_n times, not grid_n*grid_m times.
    resident_bytes = 2 * Kp * Dp * 2  # 2 pipeline buffers, bf16
    if resident_bytes <= 24 * 1024 * 1024:
        tn_eff = Dp
    else:
        tn_eff = min(512, Dp)
    grid_n = pl.cdiv(Dp, tn_eff)
    grid = (grid_n, grid_m)  # j (weight tile) outer, i (rows) inner

    # Double-buffered VMEM working set; cap below v7x's 64 MiB per-core VMEM
    # so Mosaic keeps headroom for internal scratch.
    out_bytes = jnp.dtype(out_dtype).itemsize
    vmem_needed = 2 * (tm_eff * Kp * 2 + Kp * tn_eff * 2 + tn_eff * 4
                       + tm_eff * tn_eff * out_bytes)
    vmem_limit = int(min(max(2 * vmem_needed, 8 * 1024 * 1024),
                         48 * 1024 * 1024))

    out = pl.pallas_call(
        _patch_embed_kernel,
        out_shape=jax.ShapeDtypeStruct((M, Dp), out_dtype),
        grid_spec=pltpu.PrefetchScalarGridSpec(
            num_scalar_prefetch=0,
            grid=grid,
            in_specs=[
                pl.BlockSpec((tm_eff, Kp), lambda j, i: (i, 0)),   # patch rows
                pl.BlockSpec((Kp, tn_eff), lambda j, i: (0, j)),   # weight tile
                pl.BlockSpec((1, tn_eff), lambda j, i: (0, j)),    # bias row
            ],
            out_specs=pl.BlockSpec((tm_eff, tn_eff), lambda j, i: (i, j)),
        ),
        compiler_params=pltpu.CompilerParams(
            dimension_semantics=("parallel", "parallel"),
            vmem_limit_bytes=vmem_limit,
        ),
    )(x, w, b2)

    if Dp != D:
        out = out[:, :D]
    return out


def tokenizer_transform(x, weight, bias, patch_size):
    """Equivalent of TokenizerTransform.forward with a patch-embed tokenizer.

    x: [B, C, H, W] float32 (NCHW, matching PyTorch)
    returns: [B, (H//P)*(W//P), D] float32 token embeddings
    """
    B, C, H, W = x.shape
    P = patch_size
    D = weight.shape[1]
    assert H % P == 0 and W % P == 0, "spatial dims must be divisible by patch"
    nh, nw = H // P, W // P

    # Cast to bf16 before the layout transform so the materialized transposed
    # copy costs half the HBM bytes; the kernel accumulates in f32 on the MXU.
    # NOTE: bf16 streaming is an intentional fidelity tradeoff vs. f32 Conv2d
    # (~1e-3 level deviation).
    xb = x.astype(jnp.bfloat16)
    # TODO(synk): fuse this NCHW patchification (the 6-D permute) into the
    # Pallas kernel (memory_space=pl.ANY + strided DMA gather) to remove one
    # input-sized HBM round trip; kept in XLA here for robust lowering.
    xp = xb.reshape(B, C, nh, P, nw, P)
    xp = jnp.transpose(xp, (0, 2, 4, 1, 3, 5))
    patches = xp.reshape(B * nh * nw, C * P * P)

    out = patch_embed_matmul(patches, weight, bias)
    return out.reshape(B, nh * nw, D)


if __name__ == "__main__":
    # Small shapes: batch=2, channels=4, spatial=16x16, patch=4, hidden=32.
    B, C, H, W = 2, 4, 16, 16
    P = 4
    D = 32
    K = C * P * P  # 64

    key = jax.random.PRNGKey(0)
    kx, kw, kb = jax.random.split(key, 3)
    x = jax.random.normal(kx, (B, C, H, W), dtype=jnp.float32)
    weight = jax.random.normal(kw, (K, D), dtype=jnp.float32) * 0.05
    bias = jax.random.normal(kb, (D,), dtype=jnp.float32) * 0.01

    out = tokenizer_transform(x, weight, bias, P)
    out = jax.block_until_ready(out)

    # Pure-JAX reference using the same bf16-rounded inputs + f32 accumulation.
    nh, nw = H // P, W // P
    xb = x.astype(jnp.bfloat16)
    xp = jnp.transpose(xb.reshape(B, C, nh, P, nw, P), (0, 2, 4, 1, 3, 5))
    patches = xp.reshape(B * nh * nw, K)
    ref = jnp.dot(patches, weight.astype(jnp.bfloat16),
                  preferred_element_type=jnp.float32) + bias
    ref = ref.reshape(B, nh * nw, D)

    assert out.shape == (B, nh * nw, D)
    assert jnp.allclose(out, ref, atol=2e-3, rtol=2e-3)
    print("KERNEL_OK")
</pallas_src>

<mosaic_0001>
module attributes {stable_mosaic.version = 11 : i64} {
  func.func @_patch_embed_kernel(%arg0: i32, %arg1: i32, %arg2: memref<16x128xbf16, #tpu.memory_space<vmem>>, %arg3: memref<128x32xbf16, #tpu.memory_space<vmem>>, %arg4: memref<1x32xf32, #tpu.memory_space<vmem>>, %arg5: memref<16x32xf32, #tpu.memory_space<vmem>>) attributes {dimension_semantics = [#tpu.dimension_semantics<parallel>, #tpu.dimension_semantics<parallel>], iteration_bounds = array<i64: 1, 2>, scalar_prefetch = 0 : i64, scratch_operands = 0 : i64, tpu.core_type = #tpu.core_type<tc>, window_params = [{transform_indices = @transform_0, window_bounds = array<i64: 16, 128>}, {transform_indices = @transform_1, window_bounds = array<i64: 128, 32>}, {transform_indices = @transform_2, window_bounds = array<i64: 1, 32>}, {transform_indices = @transform_3, window_bounds = array<i64: 16, 32>}]} {
    %c0 = arith.constant 0 : index
    %c0_0 = arith.constant 0 : index
    %0 = vector.load %arg2[%c0, %c0_0] : memref<16x128xbf16, #tpu.memory_space<vmem>>, vector<16x128xbf16>
    %c0_1 = arith.constant 0 : index
    %c0_2 = arith.constant 0 : index
    %1 = vector.load %arg3[%c0_1, %c0_2] : memref<128x32xbf16, #tpu.memory_space<vmem>>, vector<128x32xbf16>
    %cst = arith.constant dense<0.000000e+00> : vector<16x32xf32>
    %2 = tpu.matmul %0, %1, %cst {dimension_numbers = #tpu.dot_dimension_numbers<[1], [0], [0], [1], [0, 0, 1, 1], [], []>} : vector<16x128xbf16>, vector<128x32xbf16>, vector<16x32xf32> -> vector<16x32xf32>
    %c0_3 = arith.constant 0 : index
    %c0_4 = arith.constant 0 : index
    %3 = vector.load %arg4[%c0_3, %c0_4] : memref<1x32xf32, #tpu.memory_space<vmem>>, vector<1x32xf32>
    %4 = vector.broadcast %3 : vector<1x32xf32> to vector<16x32xf32>
    %5 = arith.addf %2, %4 : vector<16x32xf32>
    %c0_5 = arith.constant 0 : index
    %c0_6 = arith.constant 0 : index
    %6 = vector.load %arg5[%c0_5, %c0_6] : memref<16x32xf32, #tpu.memory_space<vmem>>, vector<16x32xf32>
    tpu.vector_store %arg5[%c0_5, %c0_6], %5 {strides = array<i32>} : memref<16x32xf32, #tpu.memory_space<vmem>>, vector<16x32xf32>,
    return
  }
  func.func @transform_0(%arg0: i32, %arg1: i32) -> (i32, i32) {
    %c0_i32 = arith.constant 0 : i32
    %c0_i32_0 = arith.constant 0 : i32
    return %arg1, %c0_i32 : i32, i32
  }
  func.func @transform_1(%arg0: i32, %arg1: i32) -> (i32, i32) {
    %c0_i32 = arith.constant 0 : i32
    %c0_i32_0 = arith.constant 0 : i32
    return %c0_i32, %arg0 : i32, i32
  }
  func.func @transform_2(%arg0: i32, %arg1: i32) -> (i32, i32) {
    %c0_i32 = arith.constant 0 : i32
    %c0_i32_0 = arith.constant 0 : i32
    return %c0_i32, %arg0 : i32, i32
  }
  func.func @transform_3(%arg0: i32, %arg1: i32) -> (i32, i32) {
    %c0_i32 = arith.constant 0 : i32
    return %arg1, %arg0 : i32, i32
  }
}

</mosaic_0001>

<bundles_post_ra>
// kernel: tpu_custom_call.1
= control target key start
LH: loop header
LB: loop body
LE: loop exit
PB: predicated region body
PF: predicated region fallthrough
CT: control target
= control target key end

     0   :  { %8 = vsyncpa [#allocation3], 0  ;;  %s770_s0 = inlined_call_operand.vmem [shape: bf16[32,128], index: 0, kind: input, shape index: {}]   ;;  %s771_s1 = inlined_call_operand.vmem [shape: bf16[128,32], index: 1, kind: input, shape index: {}]   ;;  %s772_s2 = inlined_call_operand.vmem [shape: f32[1,32], index: 2, kind: input, shape index: {}]   ;;  %s773_s3 = inlined_call_operand.hbm [shape: f32[32,32], index: 3, kind: output, shape index: {}]  }
   0x1   :  { %10 = vsyncpa [#allocation3 + $0x1], 0  ;;  %s647_s12 = smov 0   ;;  %s649_s13 = smov 0  }
   0x2   :  { %s651_s14 = smov 0   ;;  %s653_s15 = smov 0  }
   0x3   :  { %s655_s16 = smov 0   ;;  %s657_s17 = smov 0  }
   0x4 LB: > { %s426_s18 = sadd.s32 4294967295, %s623_s17   ;;  %s427_s19 = sadd.s32 4294967294, %s623_s17   ;;  %s623_s17 = sphi %s657_s17, %s16_s17   ;;  %s619_s16 = sphi %s655_s16, %s780_s16   ;;  %s615_s15 = sphi %s653_s15, %s779_s15   ;;  %s611_s14 = sphi %s651_s14, %s778_s14   ;;  %s607_s13 = sphi %s649_s13, %s777_s13   ;;  %s603_s12 = sphi %s647_s12, %s776_s12  }
   0x5   : > { %s25_s20 = sadd.s32 1, %s619_s16  ;;  %s115_s21 = sadd.s32 1, %s611_s14 }
   0x6   : > { %p26_p0 = scmp.ge.s32.totalorder %s25_s20, 2  ;;  %p125_p1 = scmp.ne.s32.totalorder %s611_s14, %s607_s13 }
   0x7   : > { %p126_p2 = scmp.eq.s32.totalorder %s426_s18, 1  ;;  %p131_p3 = scmp.ne.s32.totalorder %s607_s13, %s603_s12 }
   0x8   : > { %s782_s20 = smov (%p26_p0, %s25_s20), 0  ;;  %p132_p5 = scmp.eq.s32.totalorder %s427_s19, 1 }
   0x9   : > { %p687_p4 = por %p126_p2, %p125_p1  ;;  %s110_s23 = ssub.s32 %s619_s16, %s782_s20 }
   0xa   : > { %p432_p6 = scmp.ge.s32.totalorder %s623_s17, 1  ;;  %p113_p7 = scmp.eq.s32.totalorder %s110_s23, 0 }
   0xb   : > { %p694_p8 = por %p132_p5, %p131_p3  ;;  %p172_p9 = scmp.lt.s32.totalorder %s623_s17, 3 }
   0xc   : > { %s700_s25 = scalar_select %p113_p7, %s611_s14, %s115_s21  }
   0xd   : > { %p173_p10 = pnand %p432_p6, %p172_p9 }
   0xe   : > { %s434_s7 = sshll.u32 (!%p173_p10), %s615_s15, 1  ;;  %s200_s30 = sand.u32 (!%p173_p10), 1, %s607_s13  }
   0xf   : > { %176 = sbr.rel (%p173_p10) target bundleno = 192 (0xc0), region = 32  ;;  %p204_p11 = scmp.lt.s32.totalorder (!%p173_p10), %s434_s7, 3 }
  0x10   : > { %s433_s4 = sshll.u32 (!%p173_p10), %s200_s30, 4  ;;  %s486_s8 = sshll.u32 (!%p173_p10), %s615_s15, 4 }
  0x11   : > { %s323_s10 = scalar_lea.hbm (!%p173_p10), %s773_s3, %s486_s8  ;;  %s202_s11 = scalar_lea.vmem (!%p173_p10), [#allocation2], %s433_s4 }
  0x12   : > { %s324_s18 = sshll.u32 (!%p173_p10), %s202_s11, 4  ;;  %s326_s19 = sshll.u32 (!%p173_p10), %s323_s10, 4  ;;  %s325_s18 = int_to_ptr.vmem [resolvable:$true] %s324_s18  ;;  %s327_s19 = int_to_ptr.hbm [resolvable:$true] %s326_s19 }
  0x13   : > { %s559_s23 = sshra.s32 (!%p173_p10), %s327_s19, 4  ;;  %s565_s28 = scalar_lea.hbm (!%p173_p10), %s773_s3, 32  ;;  %s560_s23 = int_to_ptr.hbm [resolvable:$true] %s559_s23 }
  0x14   : > { %v485_v0 = vld [vmem:[%s771_s1 + $0x38] sm:$0xff]  ;;  %v484_v1 = vld [vmem:[%s771_s1 + $0x30] sm:$0xff]  ;;  %v483_v2 = vld [vmem:[%s771_s1 + $0x28] sm:$0xff]  ;;  %s784_s7 = smov (!%p204_p11, %s434_s7), 3  ;;  %vm307_vm0 = vcmask 261120   ;;  %s561_s15 = scalar_lea.hbm %s560_s23, 16 }
  0x15   : > { %293 = vmatpush.bf16.msra.mxu0 %v485_v0  ;;  %v482_v3 = vld [vmem:[%s771_s1 + $0x20] sm:$0xff]  ;;  %v481_v4 = vld [vmem:[%s771_s1 + $0x18] sm:$0xff]  ;;  %v480_v5 = vld [vmem:[%s771_s1 + $0x10] sm:$0xff]  ;;  %s435_s21 = sshll.u32 %s784_s7, 2  ;;  %p562_p12 = scmp.ne.s32.totalorder %s560_s23, %s561_s15 }
  0x16   : > { %v479_v6 = vld [vmem:[%s771_s1 + $0x8] sm:$0xff]  ;;  %v478_v7 = vld [vmem:[%s771_s1] sm:$0xff]  ;;  %s207_s29 = scalar_lea.vmem %s770_s0, %s435_s21  ;;  %s311_s21 = scalar_lea.sflag [#allocation3], %s200_s30 }
  0x17   : > { %v477_v8 = vld [vmem:[%s207_s29] sm:$0xff]  ;;  %p563_p13 = pnand %p562_p12, %p687_p4  ;;  %p566_p1 = scmp.lt.s32.totalorder %s560_s23, %s773_s3 }
  0x18   : > { %v544_v9 = vld [vmem:[%s772_s2] ss:$0 sm:$0xff]  ;;  %p567_p2 = scmp.lt.s32.totalorder %s565_s28, %s561_s15 }
  0x19   : > { %294 = vmatpush.bf16.msra.mxu0 %v484_v1  ;;  %p564_p0 = pneg %p563_p13 }
  0x1a   : > { %p568_p3 = por %p567_p2, %p566_p1 }
  0x1c   : > { %p569_p5 = pnand %p568_p3, %p564_p0 }
  0x1d   : > { %295 = vmatpush.bf16.msra.mxu0 %v483_v2 }
  0x21   : > { %296 = vmatpush.bf16.msra.mxu0 %v482_v3 }
  0x25   : > { %297 = vmatpush.bf16.msra.mxu0 %v481_v4 }
  0x29   : > { %298 = vmatpush.bf16.msra.mxu0 %v480_v5 }
  0x2d   : > { %299 = vmatpush.bf16.msra.mxu0 %v479_v6 }
  0x31   : > { %300 = vmatpush.bf16.msra.mxu0 %v478_v7 }
  0x34   : > { %301 = vmatmul.bf16.vlgmr.msra.gmra.mxu0 %v477_v8 }
  0xb1   : > { %v302_v10 = vpop.f32.mrf.mxu0 }
  0xb2   : > { %v303_v11 = vadd.f32 %v544_v9, %v302_v10 }
  0xb4   : > { %308 = vst.msk [vmem:[%s202_s11] sm:$0xff] %vm307_vm0, %v303_v11 }
  0xb9   : > { %v304_v12 = vpop.f32.mrf.mxu0 }
  0xba   : > { %v305_v13 = vadd.f32 %v544_v9, %v304_v12 }
  0xbc   : > { %309 = vst.msk [vmem:[%s202_s11 + $0x8] sm:$0xff] %vm307_vm0, %v305_v13 }
  0xbd   : > { %572 = shalt.err (!%p569_p5)
}
  0xbe   : > { %s625_s30 = smov 128   ;;  %s626_s5 = smov 8  }
  0xbf   : > { %487 = dma.vmem_to_hbm [thread:$0]  (%p687_p4), %s325_s18, 256, %s327_s19, %s311_s21, %s625_s30, %s625_s30, %s626_s5  }
  0xc0 PF: > { %p493_p6 = scmp.ge.s32.totalorder %s623_s17, 2  ;;  %s341_s6 = sand.u32 1, %s603_s12  }
  0xc1   : > { %s342_s8 = scalar_lea.sflag [#allocation3], %s341_s6 }
  0xc2   : > { %p490_p7 = pnand %p493_p6, %p694_p8 }
  0xc4   : > { %p491_p9 = pneg %p490_p7 }
  0xc6   : > { %598 = dma.done.wait (%p491_p9), %s342_s8, 256  }
  0xc7   : > { %600 = vsyncadd (%p491_p9), %s342_s8, 4294967040  ;;  %s16_s17 = sadd.s32 1, %s623_s17   ;;  %s776_s12 = smov %s607_s13 }
  0xc8   : > { %p13_p10 = scmp.ge.s32.totalorder %s16_s17, 4   ;;  %s777_s13 = smov %s611_s14 }
  0xc9   : > { %s778_s14 = smov %s700_s25  ;;  %s779_s15 = smov %s619_s16 }
  0xca   : > { %s780_s16 = smov %s782_s20  ;;  %15 = sbr.rel (!%p13_p10) target bundleno = 4 (0x4), region = 73 }
  0xcf   :  { %348 = vsyncpa [#allocation3], 1 }
  0xd0   :  { %350 = vsyncpa [#allocation3 + $0x1], 1 }

</bundles_post_ra>
